<compile_context>
chip_gen: v7x
topology: tpu7x:2x2x1
jax: 0.10.0
libtpu: 0.0.40
codegen_flags: <defaults>
</compile_context>

<pallas_src>
import numpy as np
import jax
import jax.numpy as jnp
from jax.experimental import pallas as pl
from jax.experimental.pallas import tpu as pltpu

# -----------------------------------------------------------------------------
# sym6 filter bank (pywt values).  LowPassFilter uses dec_lo (filter_bank[0]),
# HighPassFilter uses rec_lo (filter_bank[2]); upfirdn2d correlates with the
# REVERSED kernel, which the 1-D operator builder below reproduces exactly.
# -----------------------------------------------------------------------------
SYM6_REC_LO = (
    0.015404109327027373, 0.0034907120842174702, -0.11799011114819057,
    -0.048311742585633, 0.4910559419267466, 0.787641141030194,
    0.3379294217276218, -0.07263752278646252, -0.021060292512300564,
    0.04472490177066578, 0.0017677118642428036, -0.007800708325034148,
)
SYM6_DEC_LO = tuple(reversed(SYM6_REC_LO))

_PAD = 5      # upfirdn2d pad: (12 - 2) // 2 == (12 - 1) // 2 == 5 for both stages
_TAPS = 12


# -----------------------------------------------------------------------------
# Host-side constants: dense 1-D composite operators + bf16 hi/lo split.
# -----------------------------------------------------------------------------
def _composite_matrix(n):
    """(n, n) operator of the 1-D chain
         sym6 up-2 low-pass -> edge pad (identity warp, 'reflection') -> sym6 down-2 high-pass
       applied along one axis.  For a length-n ROW signal x:  out = x @ M."""
    taps1 = np.asarray(SYM6_DEC_LO, np.float64)[::-1]   # stage-1 correlation taps (= rec_lo)
    taps3 = np.asarray(SYM6_REC_LO, np.float64)[::-1]   # stage-3 correlation taps (= dec_lo)
    basis = np.eye(n, dtype=np.float64)                 # rows are basis signals

    # stage 1: zero-stuff x2, pad 5, correlate            -> length 2n - 1
    up = np.zeros((n, 2 * n), np.float64)
    up[:, 0::2] = basis
    a = np.pad(up, ((0, 0), (_PAD, _PAD)))
    y = np.stack([a[:, k:k + _TAPS] @ taps1
                  for k in range(a.shape[1] - _TAPS + 1)], axis=1)

    # stage 2: identity warp to size 2n with 'reflection' padding == edge copy
    y = np.concatenate([y, y[:, -1:]], axis=1)           # length 2n

    # stage 3: pad 5, correlate, decimate ::2              -> length n
    a = np.pad(y, ((0, 0), (_PAD, _PAD)))
    z = np.stack([a[:, k:k + _TAPS] @ taps3
                  for k in range(a.shape[1] - _TAPS + 1)], axis=1)
    return z[:, ::2]                                      # (n_in, n_out)


def _split_bf16(m):
    """Stack a float matrix as (hi, lo) bf16 parts; hi + lo == f32(m) to ~2^-18."""
    m32 = np.asarray(m, np.float32)
    hi = m32.astype(jnp.bfloat16)
    lo = (m32 - hi.astype(np.float32)).astype(jnp.bfloat16)
    return np.stack([hi, lo], axis=0)                     # (2, n, n) bf16


def _vmem_capacity_bytes():
    try:
        return int(pltpu.get_tpu_info().vmem_capacity_bytes)
    except Exception:
        return 64 * 1024 * 1024                           # conservative (v7x per-TC)


# -----------------------------------------------------------------------------
# Fused Pallas kernel: whole p==0 pipeline for a block of (pb, H, W) planes,
# expressed as two constant-matrix MXU matmuls per plane.
# -----------------------------------------------------------------------------
def _make_kernel(pb):
    f32, bf16 = jnp.float32, jnp.bfloat16

    def dot4(ah, al, bh, bl):
        # (ah + al) @ (bh + bl) with f32 accumulation: 4 bf16 MXU passes.
        return (jnp.dot(ah, bh, preferred_element_type=f32)
                + jnp.dot(ah, bl, preferred_element_type=f32)
                + jnp.dot(al, bh, preferred_element_type=f32)
                + jnp.dot(al, bl, preferred_element_type=f32))

    def kernel(x_ref, mw_ref, mh_ref, o_ref):
        mwh, mwl = mw_ref[0], mw_ref[1]                   # (W, W) bf16 hi/lo (right-mult)
        mhh, mhl = mh_ref[0], mh_ref[1]                   # (H, H) bf16 hi/lo (left-mult)
        for p in range(pb):                               # static unroll, pb <= 8
            xp = x_ref[p].astype(f32)                     # (H, W)
            xh = xp.astype(bf16)
            xl = (xp - xh.astype(f32)).astype(bf16)
            t = dot4(xh, xl, mwh, mwl)                    # W-axis composite   (H, W) f32
            th = t.astype(bf16)
            tl = (t - th.astype(f32)).astype(bf16)
            out = dot4(mhh, mhl, th, tl)                  # H-axis composite   (H, W) f32
            o_ref[p] = out.astype(o_ref.dtype)

    return kernel


def _fused_resample(x):
    """sym6-up(2) -> identity warp (reflection pad) -> sym6-down(2), one pallas_call."""
    B, C, H, W = x.shape
    P = B * C
    xp = x.reshape(P, H, W)

    mw = _split_bf16(_composite_matrix(W))                # t   = x @ M_w   (along W)
    mh = _split_bf16(_composite_matrix(H).T)              # out = M_h @ t   (along H)

    # ---- per-generation VMEM budget (v7x: 64 MiB/TC, v5e/v6e: 128 MiB) ------
    budget = int(_vmem_capacity_bytes() * 0.65)           # headroom for Mosaic internals
    itemsize = x.dtype.itemsize
    fixed = 2 * 2 * (mw.size + mh.size)                   # bf16 matrices, double-buffered
    per_plane = (2 * 2 * H * W * itemsize                 # in + out block, double-buffered
                 + 3 * H * W * 4)                         # f32 in-kernel temporaries headroom
    max_pb = max(1, (budget - fixed) // per_plane)

    # ---- plane packing: pb | P (no host-side pad) and >= 2 grid steps -------
    pb_cap = int(min(max_pb, 8, P))
    if P >= 2:
        pb_cap = max(1, min(pb_cap, (P + 1) // 2))        # keep both v7x TCs busy
    pb = max(d for d in range(1, pb_cap + 1) if P % d == 0)
    n_blk = P // pb
    # TODO(synk): for very large H, W a single plane's matrices/blocks no longer
    # fit (and the dense matmul wastes FLOPs over the ~12-wide band); switch to
    # block-banded M tiles + row tiling over H with a 6-sample halo.

    out = pl.pallas_call(
        _make_kernel(pb),
        out_shape=jax.ShapeDtypeStruct((P, H, W), x.dtype),
        grid=(n_blk,),
        in_specs=[pl.BlockSpec((pb, H, W), lambda p: (p, 0, 0)),
                  pl.BlockSpec((2, W, W), lambda p: (0, 0, 0)),
                  pl.BlockSpec((2, H, H), lambda p: (0, 0, 0))],
        out_specs=pl.BlockSpec((pb, H, W), lambda p: (p, 0, 0)),
        compiler_params=pltpu.CompilerParams(
            dimension_semantics=("parallel",),
            vmem_limit_bytes=budget),
    )(xp, mw, mh)
    return out.reshape(B, C, H, W)


# -----------------------------------------------------------------------------
# Forward pass (AdaptiveAugmentation.augmentation with the default p = 0.0).
# -----------------------------------------------------------------------------
@jax.jit
def _augment_p0(*xs):
    # p == 0.0: G_inv == I, colour matrix == I, band gains == 1, noise == 0,
    # cutout never taken -> those stages are exact identities, elided at trace
    # time; only the sym6 up / identity-warp / sym6 down resampling remains.
    return tuple(_fused_resample(x) for x in xs)


def adaptive_augmentation(*xs, p: float = 0.0):
    # TODO(synk): the p > 0 stochastic branches (flips / 90-deg rotations /
    # non-identity affine warp with reflection grid-sampling, colour jitter,
    # DWT band-gain draws, additive noise, cutout) are not implemented; at the
    # module's default p == 0.0 they are all exact identities.
    if p != 0.0:
        raise NotImplementedError("only the default p == 0.0 path is implemented")
    return _augment_p0(*xs)


# -----------------------------------------------------------------------------
# Plain-JAX op-by-op mirror of the p == 0.0 PyTorch path (self-check only).
# -----------------------------------------------------------------------------
def _reference_pipeline(x):
    def fir_last(a, taps, out_n):
        acc = taps[0] * a[..., 0:out_n]
        for k in range(1, len(taps)):
            acc = acc + taps[k] * a[..., k:k + out_n]
        return acc

    def upfirdn2d(a, f, up, down, pad):
        b, c, h, w = a.shape
        L = len(f)
        if up > 1:
            a = a.reshape(b, c, h, 1, w, 1)
            a = jnp.pad(a, ((0, 0), (0, 0), (0, 0), (0, up - 1), (0, 0), (0, up - 1)))
            a = a.reshape(b, c, h * up, w * up)
        a = jnp.pad(a, ((0, 0), (0, 0), (pad, pad), (pad, pad)))
        taps = tuple(reversed(f))
        hp, wp = a.shape[2], a.shape[3]
        y = fir_last(a, taps, wp - L + 1)
        y = jnp.swapaxes(y, 2, 3)
        y = fir_last(y, taps, hp - L + 1)
        y = jnp.swapaxes(y, 2, 3)
        return y[:, :, ::down, ::down] if down > 1 else y

    y = upfirdn2d(x, SYM6_DEC_LO, up=2, down=1, pad=(len(SYM6_DEC_LO) - 2) // 2)
    y = jnp.pad(y, ((0, 0), (0, 0), (0, 1), (0, 1)), mode="edge")   # identity warp
    y = upfirdn2d(y, SYM6_REC_LO, up=1, down=2, pad=(len(SYM6_REC_LO) - 1) // 2)
    return y


if __name__ == "__main__":
    key = jax.random.PRNGKey(0)
    x = jax.random.normal(key, (2, 3, 16, 16), dtype=jnp.float32)

    (out,) = adaptive_augmentation(x)
    out = jax.block_until_ready(out)

    assert out.shape == (2, 3, 16, 16) and out.dtype == jnp.float32
    assert bool(jnp.all(jnp.isfinite(out)))

    ref = _reference_pipeline(x)
    assert bool(jnp.allclose(out, ref, atol=1e-4, rtol=1e-4)), \
        float(jnp.max(jnp.abs(out - ref)))

    print("KERNEL_OK")
</pallas_src>

<mosaic_0001>
module attributes {stable_mosaic.version = 11 : i64} {
  func.func @kernel(%arg0: i32, %arg1: memref<3x16x16xf32, #tpu.memory_space<vmem>>, %arg2: memref<2x16x16xbf16, #tpu.memory_space<vmem>>, %arg3: memref<2x16x16xbf16, #tpu.memory_space<vmem>>, %arg4: memref<3x16x16xf32, #tpu.memory_space<vmem>>) attributes {dimension_semantics = [#tpu.dimension_semantics<parallel>], iteration_bounds = array<i64: 2>, scalar_prefetch = 0 : i64, scratch_operands = 0 : i64, tpu.core_type = #tpu.core_type<tc>, window_params = [{transform_indices = @transform_0, window_bounds = array<i64: 3, 16, 16>}, {pipeline_mode = #tpu.pipeline_mode<synchronous>, transform_indices = @transform_1, window_bounds = array<i64: 2, 16, 16>}, {pipeline_mode = #tpu.pipeline_mode<synchronous>, transform_indices = @transform_2, window_bounds = array<i64: 2, 16, 16>}, {transform_indices = @transform_3, window_bounds = array<i64: 3, 16, 16>}]} {
    %c0 = arith.constant 0 : index
    %c0_0 = arith.constant 0 : index
    %c0_1 = arith.constant 0 : index
    %0 = vector.load %arg2[%c0, %c0_0, %c0_1] : memref<2x16x16xbf16, #tpu.memory_space<vmem>>, vector<1x16x16xbf16>
    %1 = vector.shape_cast %0 : vector<1x16x16xbf16> to vector<16x16xbf16>
    %c1 = arith.constant 1 : index
    %c0_2 = arith.constant 0 : index
    %c0_3 = arith.constant 0 : index
    %2 = vector.load %arg2[%c1, %c0_2, %c0_3] : memref<2x16x16xbf16, #tpu.memory_space<vmem>>, vector<1x16x16xbf16>
    %3 = vector.shape_cast %2 : vector<1x16x16xbf16> to vector<16x16xbf16>
    %c0_4 = arith.constant 0 : index
    %c0_5 = arith.constant 0 : index
    %c0_6 = arith.constant 0 : index
    %4 = vector.load %arg3[%c0_4, %c0_5, %c0_6] : memref<2x16x16xbf16, #tpu.memory_space<vmem>>, vector<1x16x16xbf16>
    %5 = vector.shape_cast %4 : vector<1x16x16xbf16> to vector<16x16xbf16>
    %c1_7 = arith.constant 1 : index
    %c0_8 = arith.constant 0 : index
    %c0_9 = arith.constant 0 : index
    %6 = vector.load %arg3[%c1_7, %c0_8, %c0_9] : memref<2x16x16xbf16, #tpu.memory_space<vmem>>, vector<1x16x16xbf16>
    %7 = vector.shape_cast %6 : vector<1x16x16xbf16> to vector<16x16xbf16>
    %c0_10 = arith.constant 0 : index
    %c0_11 = arith.constant 0 : index
    %c0_12 = arith.constant 0 : index
    %8 = vector.load %arg1[%c0_10, %c0_11, %c0_12] : memref<3x16x16xf32, #tpu.memory_space<vmem>>, vector<1x16x16xf32>
    %9 = vector.shape_cast %8 : vector<1x16x16xf32> to vector<16x16xf32>
    %10 = arith.truncf %9 : vector<16x16xf32> to vector<16x16xbf16>
    %11 = arith.extf %10 : vector<16x16xbf16> to vector<16x16xf32>
    %12 = arith.subf %9, %11 : vector<16x16xf32>
    %13 = arith.truncf %12 : vector<16x16xf32> to vector<16x16xbf16>
    %cst = arith.constant dense<0.000000e+00> : vector<16x16xf32>
    %14 = tpu.matmul %10, %1, %cst {dimension_numbers = #tpu.dot_dimension_numbers<[1], [0], [0], [1], [0, 0, 1, 1], [], []>} : vector<16x16xbf16>, vector<16x16xbf16>, vector<16x16xf32> -> vector<16x16xf32>
    %cst_13 = arith.constant dense<0.000000e+00> : vector<16x16xf32>
    %15 = tpu.matmul %10, %3, %cst_13 {dimension_numbers = #tpu.dot_dimension_numbers<[1], [0], [0], [1], [0, 0, 1, 1], [], []>} : vector<16x16xbf16>, vector<16x16xbf16>, vector<16x16xf32> -> vector<16x16xf32>
    %16 = arith.addf %14, %15 : vector<16x16xf32>
    %cst_14 = arith.constant dense<0.000000e+00> : vector<16x16xf32>
    %17 = tpu.matmul %13, %1, %cst_14 {dimension_numbers = #tpu.dot_dimension_numbers<[1], [0], [0], [1], [0, 0, 1, 1], [], []>} : vector<16x16xbf16>, vector<16x16xbf16>, vector<16x16xf32> -> vector<16x16xf32>
    %18 = arith.addf %16, %17 : vector<16x16xf32>
    %cst_15 = arith.constant dense<0.000000e+00> : vector<16x16xf32>
    %19 = tpu.matmul %13, %3, %cst_15 {dimension_numbers = #tpu.dot_dimension_numbers<[1], [0], [0], [1], [0, 0, 1, 1], [], []>} : vector<16x16xbf16>, vector<16x16xbf16>, vector<16x16xf32> -> vector<16x16xf32>
    %20 = arith.addf %18, %19 : vector<16x16xf32>
    %21 = arith.truncf %20 : vector<16x16xf32> to vector<16x16xbf16>
    %22 = arith.extf %21 : vector<16x16xbf16> to vector<16x16xf32>
    %23 = arith.subf %20, %22 : vector<16x16xf32>
    %24 = arith.truncf %23 : vector<16x16xf32> to vector<16x16xbf16>
    %cst_16 = arith.constant dense<0.000000e+00> : vector<16x16xf32>
    %25 = tpu.matmul %5, %21, %cst_16 {dimension_numbers = #tpu.dot_dimension_numbers<[1], [0], [0], [1], [0, 0, 1, 1], [], []>} : vector<16x16xbf16>, vector<16x16xbf16>, vector<16x16xf32> -> vector<16x16xf32>
    %cst_17 = arith.constant dense<0.000000e+00> : vector<16x16xf32>
    %26 = tpu.matmul %5, %24, %cst_17 {dimension_numbers = #tpu.dot_dimension_numbers<[1], [0], [0], [1], [0, 0, 1, 1], [], []>} : vector<16x16xbf16>, vector<16x16xbf16>, vector<16x16xf32> -> vector<16x16xf32>
    %27 = arith.addf %25, %26 : vector<16x16xf32>
    %cst_18 = arith.constant dense<0.000000e+00> : vector<16x16xf32>
    %28 = tpu.matmul %7, %21, %cst_18 {dimension_numbers = #tpu.dot_dimension_numbers<[1], [0], [0], [1], [0, 0, 1, 1], [], []>} : vector<16x16xbf16>, vector<16x16xbf16>, vector<16x16xf32> -> vector<16x16xf32>
    %29 = arith.addf %27, %28 : vector<16x16xf32>
    %cst_19 = arith.constant dense<0.000000e+00> : vector<16x16xf32>
    %30 = tpu.matmul %7, %24, %cst_19 {dimension_numbers = #tpu.dot_dimension_numbers<[1], [0], [0], [1], [0, 0, 1, 1], [], []>} : vector<16x16xbf16>, vector<16x16xbf16>, vector<16x16xf32> -> vector<16x16xf32>
    %31 = arith.addf %29, %30 : vector<16x16xf32>
    %c0_20 = arith.constant 0 : index
    %c0_21 = arith.constant 0 : index
    %c0_22 = arith.constant 0 : index
    %32 = vector.load %arg4[%c0_20, %c0_21, %c0_22] : memref<3x16x16xf32, #tpu.memory_space<vmem>>, vector<1x16x16xf32>
    %33 = vector.shape_cast %32 : vector<1x16x16xf32> to vector<16x16xf32>
    %34 = vector.shape_cast %31 : vector<16x16xf32> to vector<1x16x16xf32>
    tpu.vector_store %arg4[%c0_20, %c0_21, %c0_22], %34 {strides = array<i32>} : memref<3x16x16xf32, #tpu.memory_space<vmem>>, vector<1x16x16xf32>,
    %c1_23 = arith.constant 1 : index
    %c0_24 = arith.constant 0 : index
    %c0_25 = arith.constant 0 : index
    %35 = vector.load %arg1[%c1_23, %c0_24, %c0_25] : memref<3x16x16xf32, #tpu.memory_space<vmem>>, vector<1x16x16xf32>
    %36 = vector.shape_cast %35 : vector<1x16x16xf32> to vector<16x16xf32>
    %37 = arith.truncf %36 : vector<16x16xf32> to vector<16x16xbf16>
    %38 = arith.extf %37 : vector<16x16xbf16> to vector<16x16xf32>
    %39 = arith.subf %36, %38 : vector<16x16xf32>
    %40 = arith.truncf %39 : vector<16x16xf32> to vector<16x16xbf16>
    %cst_26 = arith.constant dense<0.000000e+00> : vector<16x16xf32>
    %41 = tpu.matmul %37, %1, %cst_26 {dimension_numbers = #tpu.dot_dimension_numbers<[1], [0], [0], [1], [0, 0, 1, 1], [], []>} : vector<16x16xbf16>, vector<16x16xbf16>, vector<16x16xf32> -> vector<16x16xf32>
    %cst_27 = arith.constant dense<0.000000e+00> : vector<16x16xf32>
    %42 = tpu.matmul %37, %3, %cst_27 {dimension_numbers = #tpu.dot_dimension_numbers<[1], [0], [0], [1], [0, 0, 1, 1], [], []>} : vector<16x16xbf16>, vector<16x16xbf16>, vector<16x16xf32> -> vector<16x16xf32>
    %43 = arith.addf %41, %42 : vector<16x16xf32>
    %cst_28 = arith.constant dense<0.000000e+00> : vector<16x16xf32>
    %44 = tpu.matmul %40, %1, %cst_28 {dimension_numbers = #tpu.dot_dimension_numbers<[1], [0], [0], [1], [0, 0, 1, 1], [], []>} : vector<16x16xbf16>, vector<16x16xbf16>, vector<16x16xf32> -> vector<16x16xf32>
    %45 = arith.addf %43, %44 : vector<16x16xf32>
    %cst_29 = arith.constant dense<0.000000e+00> : vector<16x16xf32>
    %46 = tpu.matmul %40, %3, %cst_29 {dimension_numbers = #tpu.dot_dimension_numbers<[1], [0], [0], [1], [0, 0, 1, 1], [], []>} : vector<16x16xbf16>, vector<16x16xbf16>, vector<16x16xf32> -> vector<16x16xf32>
    %47 = arith.addf %45, %46 : vector<16x16xf32>
    %48 = arith.truncf %47 : vector<16x16xf32> to vector<16x16xbf16>
    %49 = arith.extf %48 : vector<16x16xbf16> to vector<16x16xf32>
    %50 = arith.subf %47, %49 : vector<16x16xf32>
    %51 = arith.truncf %50 : vector<16x16xf32> to vector<16x16xbf16>
    %cst_30 = arith.constant dense<0.000000e+00> : vector<16x16xf32>
    %52 = tpu.matmul %5, %48, %cst_30 {dimension_numbers = #tpu.dot_dimension_numbers<[1], [0], [0], [1], [0, 0, 1, 1], [], []>} : vector<16x16xbf16>, vector<16x16xbf16>, vector<16x16xf32> -> vector<16x16xf32>
    %cst_31 = arith.constant dense<0.000000e+00> : vector<16x16xf32>
    %53 = tpu.matmul %5, %51, %cst_31 {dimension_numbers = #tpu.dot_dimension_numbers<[1], [0], [0], [1], [0, 0, 1, 1], [], []>} : vector<16x16xbf16>, vector<16x16xbf16>, vector<16x16xf32> -> vector<16x16xf32>
    %54 = arith.addf %52, %53 : vector<16x16xf32>
    %cst_32 = arith.constant dense<0.000000e+00> : vector<16x16xf32>
    %55 = tpu.matmul %7, %48, %cst_32 {dimension_numbers = #tpu.dot_dimension_numbers<[1], [0], [0], [1], [0, 0, 1, 1], [], []>} : vector<16x16xbf16>, vector<16x16xbf16>, vector<16x16xf32> -> vector<16x16xf32>
    %56 = arith.addf %54, %55 : vector<16x16xf32>
    %cst_33 = arith.constant dense<0.000000e+00> : vector<16x16xf32>
    %57 = tpu.matmul %7, %51, %cst_33 {dimension_numbers = #tpu.dot_dimension_numbers<[1], [0], [0], [1], [0, 0, 1, 1], [], []>} : vector<16x16xbf16>, vector<16x16xbf16>, vector<16x16xf32> -> vector<16x16xf32>
    %58 = arith.addf %56, %57 : vector<16x16xf32>
    %c1_34 = arith.constant 1 : index
    %c0_35 = arith.constant 0 : index
    %c0_36 = arith.constant 0 : index
    %59 = vector.load %arg4[%c1_34, %c0_35, %c0_36] : memref<3x16x16xf32, #tpu.memory_space<vmem>>, vector<1x16x16xf32>
    %60 = vector.shape_cast %59 : vector<1x16x16xf32> to vector<16x16xf32>
    %61 = vector.shape_cast %58 : vector<16x16xf32> to vector<1x16x16xf32>
    tpu.vector_store %arg4[%c1_34, %c0_35, %c0_36], %61 {strides = array<i32>} : memref<3x16x16xf32, #tpu.memory_space<vmem>>, vector<1x16x16xf32>,
    %c2 = arith.constant 2 : index
    %c0_37 = arith.constant 0 : index
    %c0_38 = arith.constant 0 : index
    %62 = vector.load %arg1[%c2, %c0_37, %c0_38] : memref<3x16x16xf32, #tpu.memory_space<vmem>>, vector<1x16x16xf32>
    %63 = vector.shape_cast %62 : vector<1x16x16xf32> to vector<16x16xf32>
    %64 = arith.truncf %63 : vector<16x16xf32> to vector<16x16xbf16>
    %65 = arith.extf %64 : vector<16x16xbf16> to vector<16x16xf32>
    %66 = arith.subf %63, %65 : vector<16x16xf32>
    %67 = arith.truncf %66 : vector<16x16xf32> to vector<16x16xbf16>
    %cst_39 = arith.constant dense<0.000000e+00> : vector<16x16xf32>
    %68 = tpu.matmul %64, %1, %cst_39 {dimension_numbers = #tpu.dot_dimension_numbers<[1], [0], [0], [1], [0, 0, 1, 1], [], []>} : vector<16x16xbf16>, vector<16x16xbf16>, vector<16x16xf32> -> vector<16x16xf32>
    %cst_40 = arith.constant dense<0.000000e+00> : vector<16x16xf32>
    %69 = tpu.matmul %64, %3, %cst_40 {dimension_numbers = #tpu.dot_dimension_numbers<[1], [0], [0], [1], [0, 0, 1, 1], [], []>} : vector<16x16xbf16>, vector<16x16xbf16>, vector<16x16xf32> -> vector<16x16xf32>
    %70 = arith.addf %68, %69 : vector<16x16xf32>
    %cst_41 = arith.constant dense<0.000000e+00> : vector<16x16xf32>
    %71 = tpu.matmul %67, %1, %cst_41 {dimension_numbers = #tpu.dot_dimension_numbers<[1], [0], [0], [1], [0, 0, 1, 1], [], []>} : vector<16x16xbf16>, vector<16x16xbf16>, vector<16x16xf32> -> vector<16x16xf32>
    %72 = arith.addf %70, %71 : vector<16x16xf32>
    %cst_42 = arith.constant dense<0.000000e+00> : vector<16x16xf32>
    %73 = tpu.matmul %67, %3, %cst_42 {dimension_numbers = #tpu.dot_dimension_numbers<[1], [0], [0], [1], [0, 0, 1, 1], [], []>} : vector<16x16xbf16>, vector<16x16xbf16>, vector<16x16xf32> -> vector<16x16xf32>
    %74 = arith.addf %72, %73 : vector<16x16xf32>
    %75 = arith.truncf %74 : vector<16x16xf32> to vector<16x16xbf16>
    %76 = arith.extf %75 : vector<16x16xbf16> to vector<16x16xf32>
    %77 = arith.subf %74, %76 : vector<16x16xf32>
    %78 = arith.truncf %77 : vector<16x16xf32> to vector<16x16xbf16>
    %cst_43 = arith.constant dense<0.000000e+00> : vector<16x16xf32>
    %79 = tpu.matmul %5, %75, %cst_43 {dimension_numbers = #tpu.dot_dimension_numbers<[1], [0], [0], [1], [0, 0, 1, 1], [], []>} : vector<16x16xbf16>, vector<16x16xbf16>, vector<16x16xf32> -> vector<16x16xf32>
    %cst_44 = arith.constant dense<0.000000e+00> : vector<16x16xf32>
    %80 = tpu.matmul %5, %78, %cst_44 {dimension_numbers = #tpu.dot_dimension_numbers<[1], [0], [0], [1], [0, 0, 1, 1], [], []>} : vector<16x16xbf16>, vector<16x16xbf16>, vector<16x16xf32> -> vector<16x16xf32>
    %81 = arith.addf %79, %80 : vector<16x16xf32>
    %cst_45 = arith.constant dense<0.000000e+00> : vector<16x16xf32>
    %82 = tpu.matmul %7, %75, %cst_45 {dimension_numbers = #tpu.dot_dimension_numbers<[1], [0], [0], [1], [0, 0, 1, 1], [], []>} : vector<16x16xbf16>, vector<16x16xbf16>, vector<16x16xf32> -> vector<16x16xf32>
    %83 = arith.addf %81, %82 : vector<16x16xf32>
    %cst_46 = arith.constant dense<0.000000e+00> : vector<16x16xf32>
    %84 = tpu.matmul %7, %78, %cst_46 {dimension_numbers = #tpu.dot_dimension_numbers<[1], [0], [0], [1], [0, 0, 1, 1], [], []>} : vector<16x16xbf16>, vector<16x16xbf16>, vector<16x16xf32> -> vector<16x16xf32>
    %85 = arith.addf %83, %84 : vector<16x16xf32>
    %c2_47 = arith.constant 2 : index
    %c0_48 = arith.constant 0 : index
    %c0_49 = arith.constant 0 : index
    %86 = vector.load %arg4[%c2_47, %c0_48, %c0_49] : memref<3x16x16xf32, #tpu.memory_space<vmem>>, vector<1x16x16xf32>
    %87 = vector.shape_cast %86 : vector<1x16x16xf32> to vector<16x16xf32>
    %88 = vector.shape_cast %85 : vector<16x16xf32> to vector<1x16x16xf32>
    tpu.vector_store %arg4[%c2_47, %c0_48, %c0_49], %88 {strides = array<i32>} : memref<3x16x16xf32, #tpu.memory_space<vmem>>, vector<1x16x16xf32>,
    return
  }
  func.func @transform_0(%arg0: i32) -> (i32, i32, i32) {
    %c0_i32 = arith.constant 0 : i32
    %c0_i32_0 = arith.constant 0 : i32
    %c0_i32_1 = arith.constant 0 : i32
    return %arg0, %c0_i32, %c0_i32_0 : i32, i32, i32
  }
  func.func @transform_1(%arg0: i32) -> (i32, i32, i32) {
    %c0_i32 = arith.constant 0 : i32
    %c0_i32_0 = arith.constant 0 : i32
    %c0_i32_1 = arith.constant 0 : i32
    %c0_i32_2 = arith.constant 0 : i32
    return %c0_i32, %c0_i32_0, %c0_i32_1 : i32, i32, i32
  }
  func.func @transform_2(%arg0: i32) -> (i32, i32, i32) {
    %c0_i32 = arith.constant 0 : i32
    %c0_i32_0 = arith.constant 0 : i32
    %c0_i32_1 = arith.constant 0 : i32
    %c0_i32_2 = arith.constant 0 : i32
    return %c0_i32, %c0_i32_0, %c0_i32_1 : i32, i32, i32
  }
  func.func @transform_3(%arg0: i32) -> (i32, i32, i32) {
    %c0_i32 = arith.constant 0 : i32
    %c0_i32_0 = arith.constant 0 : i32
    %c0_i32_1 = arith.constant 0 : i32
    return %arg0, %c0_i32, %c0_i32_0 : i32, i32, i32
  }
}

</mosaic_0001>

<bundles_post_ra>
// kernel: _augment_p0.1
= control target key start
LH: loop header
LB: loop body
LE: loop exit
PB: predicated region body
PF: predicated region fallthrough
CT: control target
= control target key end

     0   :  { %8 = vsyncpa [#allocation3], 0  ;;  %s2304_s0 = inlined_call_operand.hbm [shape: f32[6,16,16], index: 0, kind: input, shape index: {}]   ;;  %s2305_s1 = inlined_call_operand.hbm [shape: bf16[2,16,16], index: 1, kind: input, shape index: {}]   ;;  %s2306_s2 = inlined_call_operand.vmem [shape: bf16[2,16,16], index: 2, kind: input, shape index: {}]   ;;  %s2307_s3 = inlined_call_operand.hbm [shape: f32[6,16,16], index: 3, kind: output, shape index: {}]  }
   0x1   :  { %10 = vsyncpa [#allocation3 + $0x1], 0 }
   0x2   :  { %11 = vsyncpa [#allocation6], 0 }
   0x3   :  { %12 = vsyncpa [#allocation4], 0 }
   0x4   :  { %14 = vsyncpa [#allocation4 + $0x1], 0  ;;  %s1975_s12 = smov 0   ;;  %s1977_s13 = smov 0  }
   0x5   :  { %s1979_s14 = smov 0   ;;  %s1981_s15 = smov 0  }
   0x6 LB: > { %s1996_s16 = sadd.s32 4294967295, %s1942_s15   ;;  %s1423_s17 = sadd.s32 4294967294, %s1942_s15   ;;  %s1942_s15 = sphi %s1981_s15, %s2327_s15   ;;  %s1938_s14 = sphi %s1979_s14, %s2326_s14   ;;  %s1934_s13 = sphi %s1977_s13, %s2325_s13   ;;  %s1930_s12 = sphi %s1975_s12, %s2324_s12  }
   0x7   : > { %p40_p0 = scmp.ne.s32.totalorder %s1934_s13, %s1930_s12  ;;  %p2308_p1 = scmp.eq.s32.totalorder %s1996_s16, 0 }
   0x8   : > { %p112_p3 = scmp.eq.s32.totalorder %s1423_s17, 1  ;;  %p1424_p5 = scmp.ge.s32.totalorder %s1942_s15, 1 }
   0x9   : > { %p2005_p4 = por %p2308_p1, %p40_p0  ;;  %p119_p7 = scmp.lt.s32.totalorder %s1942_s15, 3 }
   0xa   : > { %p2010_p6 = por %p112_p3, %p40_p0  ;;  %s1944_s21 = smov [#allocation5]  }
   0xb   : > { %s2311_s18 = scalar_select %p2005_p4, 1, 0 }
   0xc   : > { %s2312_s19 = scalar_select %p2010_p6, 1, 0 }
   0xd   : > { %p2015_p8 = pnand %p1424_p5, %p119_p7  ;;  %s131_s22 = sshll.u32 %s1944_s21, 4  ;;  %s2019_s22 = int_to_ptr.vmem [resolvable:$true] %s131_s22 }
   0xe   : > { %s2031_s24 = sadd.s32 1, %s1942_s15   ;;  %s27_s25 = sadd.s32 1, %s1938_s14 }
   0xf   : > { %s2313_s20 = scalar_select %p2015_p8, 1, 0 }
  0x10   : > { %p1753_p9 = pneg %p2015_p8  ;;  %s24_s26 = ssub.s32 %s1942_s15, %s2031_s24 }
  0x11   : > { %s1814_s29 = scalar_lea.hbm %s2305_s1, 256 }
  0x12   : > { %p2026_p11 = pnand %p1753_p9, %p2308_p1  ;;  %p1815_p12 = scmp.ne.s32.totalorder %s2305_s1, %s1814_s29 }
  0x13   : > { %p1821_p5 = scmp.lt.u32.totalorder %s1814_s29, %s2305_s1 }
  0x14   : > { %p1816_p13 = pneg %p2026_p11 }
  0x16   : > { %p1817_p0 = pnand %p1816_p13, %p1815_p12 }
  0x18   : > { %p1818_p3 = pneg %p1817_p0 }
  0x1a   : > { %p1823_p7 = pnand %p1821_p5, %p1818_p3 }
  0x1c   : > { %1826 = shalt.err (!%p1823_p7)
}
  0x1d   : > { %s1827_s7 = scalar_lea.vmem %s2019_s22, 256  ;;  %p1835_p2 = scmp.lt.s32.totalorder %s2019_s22, %s2019_s22 }
  0x1e   : > { %p1828_p9 = scmp.ne.s32.totalorder %s2019_s22, %s1827_s7  ;;  %p1836_p6 = scmp.lt.s32.totalorder %s1827_s7, %s1827_s7 }
  0x20   : > { %p1830_p10 = pnand %p1828_p9, %p1816_p13  ;;  %p1837_p4 = por %p1836_p6, %p1835_p2 }
  0x22   : > { %p1831_p1 = pneg %p1830_p10 }
  0x24   : > { %p1838_p8 = pnand %p1837_p4, %p1831_p1 }
  0x26   : > { %1841 = shalt.err (!%p1838_p8)
}
  0x27   : > { %s1945_s8 = smov 64   ;;  %s1946_s9 = smov 4  }
  0x28   : > { %1756 = dma.hbm_to_vmem [thread:$0]  (!%p2026_p11), %s2305_s1, 256, %s2019_s22, [#allocation6], %s1945_s8, %s1945_s8, %s1946_s9  }
  0x29   : > { %p25_p2 = scmp.eq.s32.totalorder %s24_s26, 0  ;;  %p34_p1 = scmp.ne.s32.totalorder %s1938_s14, %s1934_s13 }
  0x2a   : > { %p35_p4 = scmp.eq.s32.totalorder %s1942_s15, 0  ;;  %p1766_p6 = scmp.lt.s32.totalorder %s1942_s15, 2 }
  0x2b   : > { %s2062_s17 = scalar_select %p25_p2, %s1938_s14, %s27_s25  }
  0x2c   : > { %p36_p8 = por %p35_p4, %p34_p1  ;;  %p2315_p10 = scmp.eq.s32.totalorder %s1996_s16, 1 }
  0x2d   : > { %s148_s27 = sand.u32 1, %s1938_s14   ;;  %s1477_s28 = smul.u32 768, %s1942_s15 }
  0x2e   : > { %p2066_p12 = por %p2315_p10, %p34_p1  ;;  %s1743_s29 = smul.u32 48, %s148_s27 }
  0x2f   : > { %s2075_s4 = scalar_lea.hbm %s2304_s0, %s1477_s28  ;;  %p2077_p11 = pnand %p1766_p6, %p36_p8 }
  0x30   : > { %s152_s25 = scalar_lea.vmem [#allocation2], %s1743_s29  ;;  %s2083_s5 = scalar_lea.sflag [#allocation3], %s148_s27 }
  0x31   : > { %s160_s26 = sshll.u32 %s152_s25, 4  ;;  %s1842_s6 = scalar_lea.hbm %s2075_s4, 768  ;;  %s2081_s26 = int_to_ptr.vmem [resolvable:$true] %s160_s26 }
  0x32   : > { %p1843_p13 = scmp.ne.s32.totalorder %s2075_s4, %s1842_s6  ;;  %p1844_p0 = pneg %p2077_p11 }
  0x33   : > { %s1847_s9 = scalar_lea.hbm %s2304_s0, 1536  ;;  %p1848_p7 = scmp.lt.u32.totalorder %s2075_s4, %s2304_s0 }
  0x34   : > { %p1845_p3 = pnand %p1844_p0, %p1843_p13  ;;  %p1849_p9 = scmp.lt.u32.totalorder %s1847_s9, %s1842_s6 }
  0x35   : > { %p1851_p1 = scmp.lt.u32.totalorder %s1842_s6, %s2075_s4 }
  0x36   : > { %p1846_p5 = pneg %p1845_p3  ;;  %p1850_p2 = por %p1849_p9, %p1848_p7 }
  0x38   : > { %p1852_p4 = por %p1851_p1, %p1850_p2 }
  0x3a   : > { %p1853_p6 = pnand %p1852_p4, %p1846_p5 }
  0x3c   : > { %1856 = shalt.err (!%p1853_p6)
}
  0x3d   : > { %s1857_s27 = scalar_lea.vmem %s2081_s26, 768  ;;  %s1947_s28 = smov [#allocation2]  }
  0x3e   : > { %p1858_p8 = scmp.ne.s32.totalorder %s2081_s26, %s1857_s27  ;;  %s1862_s29 = sshll.u32 %s1947_s28, 4  ;;  %s1863_s29 = int_to_ptr.vmem [resolvable:$false] %s1862_s29 }
  0x3f   : > { %s1864_s23 = scalar_lea.vmem %s1863_s29, 1536  ;;  %p1865_p3 = scmp.lt.s32.totalorder %s2081_s26, %s1863_s29 }
  0x40   : > { %p1860_p10 = pnand %p1858_p8, %p1844_p0  ;;  %p1866_p7 = scmp.lt.s32.totalorder %s1864_s23, %s1857_s27 }
  0x42   : > { %p1861_p13 = pneg %p1860_p10  ;;  %p1867_p9 = por %p1866_p7, %p1865_p3 }
  0x44   : > { %p1868_p2 = pnand %p1867_p9, %p1861_p13 }
  0x46   : > { %1871 = shalt.err (!%p1868_p2)
}
  0x47   : > { %s1948_s30 = smov 128   ;;  %s1949_s25 = smov 8  }
  0x48   : > { %1760 = dma.hbm_to_vmem [thread:$0]  (!%p2077_p11), %s2075_s4, 768, %s2081_s26, %s2083_s5, %s1948_s30, %s1948_s30, %s1949_s25  }
  0x49   : > { %p2318_p0 = scmp.ne.s32.totalorder %s2313_s20, 0 }
  0x4a   : > { %s2114_s6 = sand.u32 (!%p2318_p0), 1, %s1934_s13   ;;  %p2319_p5 = scmp.ne.s32.totalorder (!%p2318_p0), %s2311_s18, 0 }
  0x4b   : > { %172 = sbr.rel (%p2318_p0) target bundleno = 706 (0x2c2), region = 32  ;;  %s175_s8 = scalar_lea.sflag (!%p2318_p0), [#allocation3], %s2114_s6 }
  0x4c   : > { %s1744_s7 = smul.u32 (!%p2318_p0), 48, %s2114_s6 }
  0x4e   : > { %s2120_s9 = scalar_lea.vmem (!%p2318_p0), [#allocation2], %s1744_s7 }
  0x52   : > { %1917 = dma.done.wait (%p2319_p5), %s175_s8, 768  }
  0x53   : > { %1919 = vsyncadd (%p2319_p5), %s175_s8, 4294966528  ;;  %p2320_p11 = scmp.eq.s32.totalorder %s1996_s16, 0 }
  0x55   : > { %1921 = dma.done.wait (%p2320_p11), [#allocation6], 256   ;;  %p2321_p1 = pmov %p2320_p11 }
  0x56   : > { %v1950_v0 = vmov 0.0   ;;  %vm1951_vm0 = vmmov 0   ;;  %v2136_v1 = vld [vmem:[#allocation5 + $0x8] sm:$0xff]   ;;  %v218_v2 = vld [vmem:[%s2120_s9] sm:$0xff]  ;;  %vm232_vm1 = vcmask 130048   ;;  %v1445_v11 = vld [vmem:[%s2120_s9 + $0x10] sm:$0xff] }
  0x57   : > { %1923 = vsyncadd (%p2321_p1), [#allocation6], 4294967040  ;;  %1527 = vmatprep.subr.bf16.mxu0 %v1950_v0  ;;  %1529 = vmatprep.mubr.msk.bf16.mxu0 %vm1951_vm0, %v1950_v0  ;;  %v219_v3 = vld [vmem:[%s2120_s9 + $0x8] sm:$0xff]  ;;  %v1811_v5 = vld [vmem:[#allocation5] sm:$0xff]   ;;  %s204_s26 = scalar_lea.vmem [#allocation7], %s1744_s7  ;;  %s1478_s10 = smul.u32 768, %s1996_s16 }
  0x58   : > { %1551 = vmatprep.subr.bf16.mxu1 %v1950_v0  ;;  %1553 = vmatprep.mubr.msk.bf16.mxu1 %vm1951_vm0, %v1950_v0  ;;  %v220_v4 = vpack.c.bf16 %v219_v3, %v218_v2  ;;  %v1446_v12 = vld [vmem:[%s2120_s9 + $0x18] sm:$0xff]  ;;  %v1457_v19 = vld [vmem:[%s2120_s9 + $0x20] sm:$0xff]  ;;  %v1458_v20 = vld [vmem:[%s2120_s9 + $0x28] sm:$0xff]  ;;  %s1340_s5 = sshll.u32 %s204_s26, 4  ;;  %s1326_s29 = scalar_lea.sflag [#allocation4], %s2114_s6  ;;  %s2253_s5 = int_to_ptr.vmem [resolvable:$true] %s1340_s5 }
  0x59   : > { %1528 = vmatpush3.bf16.msra.mxu0 %v2136_v1  ;;  %v608_v13 = vpack.c.bf16 %v1446_v12, %v1445_v11  ;;  %v968_v21 = vpack.c.bf16 %v1458_v20, %v1457_v19  ;;  %v1812_v37 = vld [vmem:[%s2306_s2] sm:$0xff]   ;;  %v1813_v38 = vld [vmem:[%s2306_s2 + $0x8] sm:$0xff]   ;;  %s2259_s28 = scalar_lea.hbm %s2307_s3, %s1478_s10  ;;  %s1872_s16 = scalar_lea.vmem %s2253_s5, 768 }
  0x5a   : > { %1533 = vmatprep.subr.bf16.mxu0 %v1950_v0  ;;  %v221_v6 = vunpack.c.l.bf16 %v220_v4  ;;  %v222_v7 = vunpack.c.h.bf16 %v220_v4  ;;  %p1873_p4 = scmp.ne.s32.totalorder %s2253_s5, %s1872_s16  ;;  %s1952_s23 = smov [#allocation7]  }
  0x5b   : > { %v609_v14 = vunpack.c.l.bf16 %v608_v13  ;;  %v610_v15 = vunpack.c.h.bf16 %v608_v13  ;;  %v969_v22 = vunpack.c.l.bf16 %v968_v21  ;;  %v970_v23 = vunpack.c.h.bf16 %v968_v21  ;;  %s1876_s30 = sshll.u32 %s1952_s23, 4  ;;  %s1877_s30 = int_to_ptr.vmem [resolvable:$false] %s1876_s30 }
  0x5c   : > { %1530 = vmatmul.mubr.msk.bf16.vlgmr.msra.gmra.mrb[0].mxu0 %vm232_vm1, %v220_v4  ;;  %v223_v8 = vsub.f32 %v218_v2, %v221_v6  ;;  %v224_v9 = vsub.f32 %v219_v3, %v222_v7  ;;  %p1874_p6 = pnand %p1873_p4, %p2066_p12  ;;  %s1878_s25 = scalar_lea.vmem %s1877_s30, 1536 }
  0x5d   : > { %1534 = vmatpush3.bf16.msra.mxu0 %v1811_v5  ;;  %1535 = vmatprep.mubr.msk.bf16.mxu0 %vm1951_vm0, %v1950_v0  ;;  %v611_v16 = vsub.f32 %v1445_v11, %v609_v14  ;;  %v612_v17 = vsub.f32 %v1446_v12, %v610_v15  ;;  %v971_v24 = vsub.f32 %v1457_v19, %v969_v22  ;;  %p1879_p10 = scmp.lt.s32.totalorder %s2253_s5, %s1877_s30  ;;  %p1880_p13 = scmp.lt.s32.totalorder %s1878_s25, %s1872_s16 }
  0x5e   : > { %1539 = vmatprep.subr.bf16.mxu0 %v1950_v0  ;;  %v225_v10 = vpack.c.bf16 %v224_v9, %v223_v8  ;;  %v972_v25 = vsub.f32 %v1458_v20, %v970_v23  ;;  %p1875_p8 = pneg %p1874_p6 }
  0x5f   : > { %v613_v18 = vpack.c.bf16 %v612_v17, %v611_v16  ;;  %p1881_p3 = por %p1880_p13, %p1879_p10 }
  0x60   : > { %v973_v26 = vpack.c.bf16 %v972_v25, %v971_v24 }
  0x61   : > { %p1882_p7 = pnand %p1881_p3, %p1875_p8 }
  0x68   : > { %1536 = vmatmul.mubr.msk.bf16.vlgmr.msra.gmra.mrb[0].mxu0 %vm232_vm1, %v220_v4 }
  0x69   : > { %1540 = vmatpush3.bf16.msra.mxu0 %v1811_v5  ;;  %1541 = vmatprep.mubr.msk.bf16.mxu0 %vm1951_vm0, %v1950_v0 }
  0x6a   : > { %1545 = vmatprep.subr.bf16.mxu0 %v1950_v0 }
  0x74   : > { %1542 = vmatmul.mubr.msk.bf16.vlgmr.msra.gmra.mrb[0].mxu0 %vm232_vm1, %v225_v10 }
  0x75   : > { %1546 = vmatpush3.bf16.msra.mxu0 %v2136_v1  ;;  %1547 = vmatprep.mubr.msk.bf16.mxu0 %vm1951_vm0, %v1950_v0 }
  0x76   : > { %1575 = vmatprep.subr.bf16.mxu0 %v1950_v0 }
  0x80   : > { %1548 = vmatmul.mubr.msk.bf16.vlgmr.msra.gmra.mrb[0].mxu0 %vm232_vm1, %v225_v10 }
  0x81   : > { %1576 = vmatpush3.bf16.msra.mxu0 %v2136_v1  ;;  %1577 = vmatprep.mubr.msk.bf16.mxu0 %vm1951_vm0, %v1950_v0 }
  0x82   : > { %1581 = vmatprep.subr.bf16.mxu0 %v1950_v0 }
  0x88   : > { %1578 = vmatmul.mubr.msk.bf16.vlgmr.msra.gmra.mrb[4].mxu0 %vm232_vm1, %v608_v13 }
  0x89   : > { %1582 = vmatpush3.bf16.msra.mxu0 %v1811_v5  ;;  %1583 = vmatprep.mubr.msk.bf16.mxu0 %vm1951_vm0, %v1950_v0 }
  0x8a   : > { %1587 = vmatprep.subr.bf16.mxu0 %v1950_v0 }
  0x94   : > { %1584 = vmatmul.mubr.msk.bf16.vlgmr.msra.gmra.mrb[4].mxu0 %vm232_vm1, %v608_v13 }
  0x95   : > { %1588 = vmatpush3.bf16.msra.mxu0 %v1811_v5  ;;  %1589 = vmatprep.mubr.msk.bf16.mxu0 %vm1951_vm0, %v1950_v0 }
  0x96   : > { %1593 = vmatprep.subr.bf16.mxu0 %v1950_v0 }
  0xa0   : > { %1590 = vmatmul.mubr.msk.bf16.vlgmr.msra.gmra.mrb[4].mxu0 %vm232_vm1, %v613_v18 }
  0xa1   : > { %1594 = vmatpush3.bf16.msra.mxu0 %v2136_v1  ;;  %1595 = vmatprep.mubr.msk.bf16.mxu0 %vm1951_vm0, %v1950_v0 }
  0xa2   : > { %1623 = vmatprep.subr.bf16.mxu0 %v1950_v0 }
  0xac   : > { %1596 = vmatmul.mubr.msk.bf16.vlgmr.msra.gmra.mrb[4].mxu0 %vm232_vm1, %v613_v18 }
  0xad   : > { %1624 = vmatpush3.bf16.msra.mxu0 %v2136_v1  ;;  %1625 = vmatprep.mubr.msk.bf16.mxu0 %vm1951_vm0, %v1950_v0 }
  0xae   : > { %1629 = vmatprep.subr.bf16.mxu0 %v1950_v0 }
  0xb4   : > { %1626 = vmatmul.mubr.msk.bf16.vlgmr.msra.gmra.mrb[8].mxu0 %vm232_vm1, %v968_v21 }
  0xb5   : > { %1630 = vmatpush3.bf16.msra.mxu0 %v1811_v5  ;;  %1631 = vmatprep.mubr.msk.bf16.mxu0 %vm1951_vm0, %v1950_v0 }
  0xb6   : > { %1635 = vmatprep.subr.bf16.mxu0 %v1950_v0 }
  0xc0   : > { %1632 = vmatmul.mubr.msk.bf16.vlgmr.msra.gmra.mrb[8].mxu0 %vm232_vm1, %v968_v21 }
  0xc1   : > { %1636 = vmatpush3.bf16.msra.mxu0 %v1811_v5  ;;  %1637 = vmatprep.mubr.msk.bf16.mxu0 %vm1951_vm0, %v1950_v0 }
  0xc2   : > { %1641 = vmatprep.subr.bf16.mxu0 %v1950_v0 }
  0xcc   : > { %1638 = vmatmul.mubr.msk.bf16.vlgmr.msra.gmra.mrb[8].mxu0 %vm232_vm1, %v973_v26 }
  0xcd   : > { %1642 = vmatpush3.bf16.msra.mxu0 %v2136_v1  ;;  %1643 = vmatprep.mubr.msk.bf16.mxu0 %vm1951_vm0, %v1950_v0 }
  0xd8   : > { %1644 = vmatmul.mubr.msk.bf16.vlgmr.msra.gmra.mrb[8].mxu0 %vm232_vm1, %v973_v26 }
 0x153   : > { %v404_v27 = vpop.f32.mrb[0].mxu0 }
 0x154   : > { %v1549_v28 = vpop.f32.mrb[1].mxu0 }
 0x155   : > { %v407_v29 = vpop.f32.mrb[2].mxu0 }
 0x156   : > { %v413_v30 = vpack.c.bf16 %v407_v29, %v404_v27  ;;  %v1550_v31 = vpop.f32.mrb[3].mxu0 }
 0x158   : > { %v415_v32 = vunpack.c.h.bf16 %v413_v30  ;;  %v414_v33 = vunpack.c.l.bf16 %v413_v30 }
 0x15a   : > { %v417_v34 = vsub.f32 %v407_v29, %v415_v32  ;;  %v416_v35 = vsub.f32 %v404_v27, %v414_v33 }
 0x15c   : > { %v418_v36 = vpack.c.bf16 %v417_v34, %v416_v35 }
 0x15e   : > { %1552 = vmatpush3.bf16.msra.mxu1 %v418_v36 }
 0x15f   : > { %1557 = vmatprep.subr.bf16.mxu1 %v1950_v0 }
 0x161   : > { %1554 = vmatmul.mubr.msk.bf16.vlgmr.msra.gmra.mrb[0].mxu1 %vm232_vm1, %v1812_v37 }
 0x162   : > { %1558 = vmatpush3.bf16.msra.mxu1 %v413_v30  ;;  %1559 = vmatprep.mubr.msk.bf16.mxu1 %vm1951_vm0, %v1950_v0 }
 0x163   : > { %1563 = vmatprep.subr.bf16.mxu1 %v1950_v0 }
 0x16d   : > { %1560 = vmatmul.mubr.msk.bf16.vlgmr.msra.gmra.mrb[0].mxu1 %vm232_vm1, %v1812_v37 }
 0x16e   : > { %1564 = vmatpush3.bf16.msra.mxu1 %v413_v30  ;;  %1565 = vmatprep.mubr.msk.bf16.mxu1 %vm1951_vm0, %v1950_v0 }
 0x16f   : > { %1569 = vmatprep.subr.bf16.mxu1 %v1950_v0 }
 0x179   : > { %1566 = vmatmul.mubr.msk.bf16.vlgmr.msra.gmra.mrb[0].mxu1 %vm232_vm1, %v1813_v38 }
 0x17a   : > { %1570 = vmatpush3.bf16.msra.mxu1 %v418_v36  ;;  %1571 = vmatprep.mubr.msk.bf16.mxu1 %vm1951_vm0, %v1950_v0 }
 0x17b   : > { %1599 = vmatprep.subr.bf16.mxu1 %v1950_v0 }
 0x17f   : > { %v779_v39 = vpop.f32.mrb[4].mxu0 }
 0x180   : > { %v1597_v40 = vpop.f32.mrb[5].mxu0 }
 0x181   : > { %v782_v41 = vpop.f32.mrb[6].mxu0 }
 0x182   : > { %v788_v42 = vpack.c.bf16 %v782_v41, %v779_v39  ;;  %v1598_v43 = vpop.f32.mrb[7].mxu0 }
 0x184   : > { %v789_v44 = vunpack.c.l.bf16 %v788_v42  ;;  %v790_v45 = vunpack.c.h.bf16 %v788_v42 }
 0x185   : > { %1572 = vmatmul.mubr.msk.bf16.vlgmr.msra.gmra.mrb[0].mxu1 %vm232_vm1, %v1813_v38 }
 0x186   : > { %v791_v46 = vsub.f32 %v779_v39, %v789_v44  ;;  %v792_v47 = vsub.f32 %v782_v41, %v790_v45  ;;  %1601 = vmatprep.mubr.msk.bf16.mxu1 %vm1951_vm0, %v1950_v0 }
 0x188   : > { %v793_v48 = vpack.c.bf16 %v792_v47, %v791_v46 }
 0x18a   : > { %1600 = vmatpush3.bf16.msra.mxu1 %v793_v48 }
 0x18b   : > { %1605 = vmatprep.subr.bf16.mxu1 %v1950_v0 }
 0x18d   : > { %1602 = vmatmul.mubr.msk.bf16.vlgmr.msra.gmra.mrb[4].mxu1 %vm232_vm1, %v1812_v37 }
 0x18e   : > { %1606 = vmatpush3.bf16.msra.mxu1 %v788_v42  ;;  %1607 = vmatprep.mubr.msk.bf16.mxu1 %vm1951_vm0, %v1950_v0 }
 0x18f   : > { %1611 = vmatprep.subr.bf16.mxu1 %v1950_v0 }
 0x199   : > { %1608 = vmatmul.mubr.msk.bf16.vlgmr.msra.gmra.mrb[4].mxu1 %vm232_vm1, %v1812_v37 }
 0x19a   : > { %1612 = vmatpush3.bf16.msra.mxu1 %v788_v42  ;;  %1613 = vmatprep.mubr.msk.bf16.mxu1 %vm1951_vm0, %v1950_v0 }
 0x19b   : > { %1617 = vmatprep.subr.bf16.mxu1 %v1950_v0 }
 0x1a5   : > { %1614 = vmatmul.mubr.msk.bf16.vlgmr.msra.gmra.mrb[4].mxu1 %vm232_vm1, %v1813_v38 }
 0x1a6   : > { %1618 = vmatpush3.bf16.msra.mxu1 %v793_v48  ;;  %1619 = vmatprep.mubr.msk.bf16.mxu1 %vm1951_vm0, %v1950_v0 }
 0x1a7   : > { %1647 = vmatprep.subr.bf16.mxu1 %v1950_v0 }
 0x1ab   : > { %v1139_v49 = vpop.f32.mrb[8].mxu0 }
 0x1ac   : > { %v1645_v50 = vpop.f32.mrb[9].mxu0 }
 0x1ad   : > { %v1142_v51 = vpop.f32.mrb[10].mxu0 }
 0x1ae   : > { %v1148_v52 = vpack.c.bf16 %v1142_v51, %v1139_v49  ;;  %v1646_v53 = vpop.f32.mrb[11].mxu0 }
 0x1b0   : > { %v1149_v54 = vunpack.c.l.bf16 %v1148_v52  ;;  %v1150_v55 = vunpack.c.h.bf16 %v1148_v52 }
 0x1b1   : > { %1620 = vmatmul.mubr.msk.bf16.vlgmr.msra.gmra.mrb[4].mxu1 %vm232_vm1, %v1813_v38 }
 0x1b2   : > { %v1151_v56 = vsub.f32 %v1139_v49, %v1149_v54  ;;  %v1152_v57 = vsub.f32 %v1142_v51, %v1150_v55  ;;  %1649 = vmatprep.mubr.msk.bf16.mxu1 %vm1951_vm0, %v1950_v0 }
 0x1b4   : > { %v1153_v58 = vpack.c.bf16 %v1152_v57, %v1151_v56 }
 0x1b6   : > { %1648 = vmatpush3.bf16.msra.mxu1 %v1153_v58 }
 0x1b7   : > { %1653 = vmatprep.subr.bf16.mxu1 %v1950_v0 }
 0x1b9   : > { %1650 = vmatmul.mubr.msk.bf16.vlgmr.msra.gmra.mrb[8].mxu1 %vm232_vm1, %v1812_v37 }
 0x1ba   : > { %1654 = vmatpush3.bf16.msra.mxu1 %v1148_v52  ;;  %1655 = vmatprep.mubr.msk.bf16.mxu1 %vm1951_vm0, %v1950_v0 }
 0x1bb   : > { %1659 = vmatprep.subr.bf16.mxu1 %v1950_v0 }
 0x1c5   : > { %1656 = vmatmul.mubr.msk.bf16.vlgmr.msra.gmra.mrb[8].mxu1 %vm232_vm1, %v1812_v37 }
 0x1c6   : > { %1660 = vmatpush3.bf16.msra.mxu1 %v1148_v52  ;;  %1661 = vmatprep.mubr.msk.bf16.mxu1 %vm1951_vm0, %v1950_v0 }
 0x1c7   : > { %1665 = vmatprep.subr.bf16.mxu1 %v1950_v0 }
 0x1d1   : > { %1662 = vmatmul.mubr.msk.bf16.vlgmr.msra.gmra.mrb[8].mxu1 %vm232_vm1, %v1813_v38 }
 0x1d2   : > { %1666 = vmatpush3.bf16.msra.mxu1 %v1153_v58  ;;  %1667 = vmatprep.mubr.msk.bf16.mxu1 %vm1951_vm0, %v1950_v0 }
 0x1dd   : > { %1668 = vmatmul.mubr.msk.bf16.vlgmr.msra.gmra.mrb[8].mxu1 %vm232_vm1, %v1813_v38 }
 0x258   : > { %v594_v59 = vpop.f32.mrb[0].mxu1 }
 0x259   : > { %603 = vst.msk [vmem:[%s204_s26] sm:$0xff] %vm232_vm1, %v594_v59  ;;  %v1573_v60 = vpop.f32.mrb[1].mxu1 }
 0x25a   : > { %v597_v61 = vpop.f32.mrb[2].mxu1 }
 0x25b   : > { %604 = vst.msk [vmem:[%s204_s26 + $0x8] sm:$0xff] %vm232_vm1, %v597_v61  ;;  %v1574_v62 = vpop.f32.mrb[3].mxu1 }
 0x284   : > { %v953_v63 = vpop.f32.mrb[4].mxu1 }
 0x285   : > { %1455 = vst.msk [vmem:[%s204_s26 + $0x10] sm:$0xff] %vm232_vm1, %v953_v63  ;;  %v1621_v1 = vpop.f32.mrb[5].mxu1 }
 0x286   : > { %v956_v2 = vpop.f32.mrb[6].mxu1 }
 0x287   : > { %1456 = vst.msk [vmem:[%s204_s26 + $0x18] sm:$0xff] %vm232_vm1, %v956_v2  ;;  %v1622_v0 = vpop.f32.mrb[7].mxu1 }
 0x2b0   : > { %v1313_v3 = vpop.f32.mrb[8].mxu1 }
 0x2b1   : > { %1467 = vst.msk [vmem:[%s204_s26 + $0x20] sm:$0xff] %vm232_vm1, %v1313_v3  ;;  %v1669_v4 = vpop.f32.mrb[9].mxu1 }
 0x2b2   : > { %v1316_v5 = vpop.f32.mrb[10].mxu1 }
 0x2b3   : > { %1468 = vst.msk [vmem:[%s204_s26 + $0x28] sm:$0xff] %vm232_vm1, %v1316_v5  ;;  %v1670_v6 = vpop.f32.mrb[11].mxu1 }
 0x2b4   : > { %1885 = shalt.err (!%p1882_p7)
}
 0x2b5   : > { %s1886_s7 = scalar_lea.hbm %s2259_s28, 768  ;;  %s1890_s18 = scalar_lea.hbm %s2307_s3, 1536 }
 0x2b6   : > { %p1887_p9 = scmp.ne.s32.totalorder %s2259_s28, %s1886_s7  ;;  %p1891_p5 = scmp.lt.u32.totalorder %s2259_s28, %s2307_s3 }
 0x2b7   : > { %p1892_p11 = scmp.lt.u32.totalorder %s1890_s18, %s1886_s7  ;;  %p1894_p4 = scmp.lt.u32.totalorder %s1886_s7, %s2259_s28 }
 0x2b8   : > { %p1888_p2 = pnand %p1887_p9, %p2066_p12 }
 0x2b9   : > { %p1893_p1 = por %p1892_p11, %p1891_p5 }
 0x2ba   : > { %p1889_p0 = pneg %p1888_p2 }
 0x2bb   : > { %p1895_p6 = por %p1894_p4, %p1893_p1 }
 0x2bd   : > { %p1896_p8 = pnand %p1895_p6, %p1889_p0 }
 0x2bf   : > { %1899 = shalt.err (!%p1896_p8)
}
 0x2c0   : > { %s1953_s22 = smov 128   ;;  %s1954_s26 = smov 8  }
 0x2c1   : > { %1751 = dma.vmem_to_hbm [thread:$0]  (%p2066_p12), %s2253_s5, 768, %s2259_s28, %s1326_s29, %s1953_s22, %s1953_s22, %s1954_s26  }
 0x2c2 PF: > { %s1355_s10 = sand.u32 1, %s1930_s12   ;;  %p2322_p10 = scmp.ne.s32.totalorder %s2312_s19, 0 }
 0x2c3   : > { %p2323_p13 = scmp.ge.s32.totalorder %s1942_s15, 2  ;;  %s1356_s11 = scalar_lea.sflag [#allocation4], %s1355_s10 }
 0x2c5   : > { %p1762_p3 = pnand %p2323_p13, %p2322_p10 }
 0x2c7   : > { %1925 = dma.done.wait (!%p1762_p3), %s1356_s11, 768  }
 0x2c8   : > { %1927 = vsyncadd (!%p1762_p3), %s1356_s11, 4294966528  ;;  %p17_p7 = scmp.ge.s32.totalorder %s2031_s24, 4   ;;  %s2324_s12 = smov %s1934_s13 }
 0x2c9   : > { %s2325_s13 = smov %s1938_s14  ;;  %s2326_s14 = smov %s2062_s17 }
 0x2ca   : > { %s2327_s15 = smov %s2031_s24  ;;  %19 = sbr.rel (!%p17_p7) target bundleno = 6 (0x6), region = 87 }
 0x2d1   :  { %1361 = vsyncpa [#allocation3], 1 }
 0x2d2   :  { %1363 = vsyncpa [#allocation3 + $0x1], 1 }
 0x2d3   :  { %1364 = vsyncpa [#allocation6], 1 }
 0x2d4   :  { %1365 = vsyncpa [#allocation4], 1 }
 0x2d5   :  { %1367 = vsyncpa [#allocation4 + $0x1], 1 }

</bundles_post_ra>
